<compile_context>
chip_gen: v7x
topology: tpu7x:2x2x1
jax: 0.10.0
libtpu: 0.0.40
codegen_flags: <defaults>
</compile_context>

<pallas_src>
import functools

import jax
import jax.numpy as jnp
from jax.experimental import pallas as pl
from jax.experimental.pallas import tpu as pltpu

EPS = 1e-5


# --------------------------------- kernel -----------------------------------
def _residual_kernel(*refs, H, W, Cout, use_1x1conv):
    if use_1x1conv:
        (x_ref, wb1_ref, wb2_ref, wres_ref, bres_ref,
         g1_ref, be1_ref, g2_ref, be2_ref, out_ref) = refs
    else:
        (x_ref, wb1_ref, wb2_ref,
         g1_ref, be1_ref, g2_ref, be2_ref, out_ref) = refs

    nh = x_ref.shape[0]              # N * H
    inv_m = 1.0 / float(nh * W)      # 1 / (N*H*W): elements per channel (BN)

    x = x_ref[...]                   # (N*H, W*Cin), lane-packed

    def conv3x3(act, wb_ref):
        """3x3 / pad-1 / stride-1 conv on a lane-packed (N*H, W*C) activation.

        kw taps + width zero-padding are baked into the banded weights, so
        each kh tap is one MXU matmul; the kh shift is a sublane roll with
        the height halo rows masked to zero.
        """
        n_rows, lc = act.shape
        h_idx = jax.lax.broadcasted_iota(jnp.int32, (n_rows, lc), 0) % H
        up = pltpu.roll(act, 1, axis=0)             # row r <- row r-1
        up = jnp.where(h_idx == 0, 0.0, up)         # top halo (h-1 < 0)
        dn = pltpu.roll(act, n_rows - 1, axis=0)    # row r <- row r+1
        dn = jnp.where(h_idx == H - 1, 0.0, dn)     # bottom halo (h+1 >= H)
        acc = jnp.dot(up, wb_ref[0], preferred_element_type=jnp.float32)
        acc = acc + jnp.dot(act, wb_ref[1], preferred_element_type=jnp.float32)
        acc = acc + jnp.dot(dn, wb_ref[2], preferred_element_type=jnp.float32)
        return acc

    def channel_allreduce(v):
        """(1, W*Cout) lane vector -> per-channel totals, already broadcast
        back across the W lane groups (butterfly of lane rolls on the XLU)."""
        if W & (W - 1) == 0:                    # power-of-two W: log2(W) rolls
            s = Cout
            while s < W * Cout:
                v = v + pltpu.roll(v, s, axis=1)
                s *= 2
            return v
        acc = v                                 # generic W: W-1 rolls
        for k in range(1, W):
            acc = acc + pltpu.roll(v, k * Cout, axis=1)
        return acc

    def batchnorm(acc, g_ref, be_ref):
        # One-pass batch stats (E[x], E[x^2]); conv bias omitted upstream since
        # it cancels exactly under the mean subtraction.  Folded scale + shift.
        mean = channel_allreduce(jnp.sum(acc, axis=0, keepdims=True)) * inv_m
        ex2 = channel_allreduce(jnp.sum(acc * acc, axis=0, keepdims=True)) * inv_m
        var = ex2 - mean * mean
        scale = g_ref[...] * jax.lax.rsqrt(var + EPS)
        shift = be_ref[...] - mean * scale
        return acc * scale + shift

    y = jnp.maximum(batchnorm(conv3x3(x, wb1_ref), g1_ref, be1_ref), 0.0)
    y2 = batchnorm(conv3x3(y, wb2_ref), g2_ref, be2_ref)

    if use_1x1conv:
        res = jnp.dot(x, wres_ref[...],
                      preferred_element_type=jnp.float32) + bres_ref[...]
    else:
        res = x                                  # identity shortcut (Cin==Cout)

    out_ref[...] = jnp.maximum(y2 + res, 0.0)    # lane-dense (N*H, W*Cout) store


# --------------------------- wrapper-side repacking --------------------------
def _band_conv_weights(w_hwio, W):
    """(3, 3, Ci, Co) HWIO -> (3, W*Ci, W*Co) banded weights for the
    lane-packed layout (output col w_out = w_in - (kw - 1); missing bands
    implement the width zero-padding).  One-time weight/layout prep."""
    KH, KW, Ci, Co = w_hwio.shape
    wi = jnp.arange(W)[:, None]
    wo = jnp.arange(W)[None, :]
    out = jnp.zeros((KH, W, Ci, W, Co), w_hwio.dtype)
    for kw in range(KW):
        sel = (wo == wi - (kw - 1)).astype(w_hwio.dtype)           # (W, W)
        out = out + (sel[None, :, None, :, None]
                     * w_hwio[:, kw][:, None, :, None, :])
    return out.reshape(KH, W * Ci, W * Co)


def _block_diag_1x1(w3, W):
    """(Ci, Co) 1x1-conv weight -> block-diagonal (W*Ci, W*Co)."""
    Ci, Co = w3.shape
    eye = jnp.eye(W, dtype=w3.dtype)
    return (eye[:, None, :, None] * w3[None, :, None, :]).reshape(W * Ci, W * Co)


def _tile_channels(v, Cout, W):
    return jnp.tile(v.reshape(1, Cout), (1, W))      # lane w*Cout + c -> v[c]


def residual_forward(x_nchw, params, *, use_1x1conv):
    """Pallas implementation of Residual.forward.  x_nchw: (N, Cin, H, W)."""
    N, Cin, H, W = x_nchw.shape
    Cout = params["w1"].shape[-1]
    if not use_1x1conv:
        assert Cin == Cout, "identity shortcut requires Cin == Cout"

    # NCHW -> lane-packed (N*H, W*Cin).  Boundary transposes kept only to
    # preserve the PyTorch NCHW interface (layout plumbing).
    x2 = jnp.transpose(x_nchw, (0, 2, 3, 1)).astype(jnp.float32)
    x2 = x2.reshape(N * H, W * Cin)

    wb1 = _band_conv_weights(params["w1"], W)        # (3, W*Cin,  W*Cout)
    wb2 = _band_conv_weights(params["w2"], W)        # (3, W*Cout, W*Cout)
    g1 = _tile_channels(params["g1"], Cout, W)
    be1 = _tile_channels(params["be1"], Cout, W)
    g2 = _tile_channels(params["g2"], Cout, W)
    be2 = _tile_channels(params["be2"], Cout, W)
    # NOTE: b1/b2 are intentionally NOT passed -- bias before BatchNorm
    # cancels exactly under the batch-mean subtraction.

    args = [x2, wb1, wb2]
    if use_1x1conv:
        args += [_block_diag_1x1(params["w3"], W),
                 _tile_channels(params["b3"], Cout, W)]
    args += [g1, be1, g2, be2]

    kernel = functools.partial(_residual_kernel, H=H, W=W, Cout=Cout,
                               use_1x1conv=use_1x1conv)
    vmem = pl.BlockSpec(memory_space=pltpu.MemorySpace.VMEM)
    out2 = pl.pallas_call(
        kernel,
        out_shape=jax.ShapeDtypeStruct((N * H, W * Cout), jnp.float32),
        in_specs=[vmem] * len(args),
        out_specs=vmem,
        compiler_params=pltpu.CompilerParams(vmem_limit_bytes=32 * 1024 * 1024),
    )(*args)

    # Lane-packed (N*H, W*Cout) -> NCHW for the PyTorch-style interface.
    return jnp.transpose(out2.reshape(N, H, W, Cout), (0, 3, 1, 2))


# ----------------------------- pure-JAX reference ----------------------------
def _reference(x_nchw, params, *, use_1x1conv):
    x = jnp.transpose(x_nchw, (0, 2, 3, 1)).astype(jnp.float32)

    def conv3x3(a, w, b):
        y = jax.lax.conv_general_dilated(
            a, w, window_strides=(1, 1), padding=((1, 1), (1, 1)),
            dimension_numbers=("NHWC", "HWIO", "NHWC"))
        return y + b.reshape(1, 1, 1, -1)

    def bn(y, g, be):
        mu = jnp.mean(y, axis=(0, 1, 2), keepdims=True)
        var = jnp.mean((y - mu) ** 2, axis=(0, 1, 2), keepdims=True)
        return (g.reshape(1, 1, 1, -1) * (y - mu) * jax.lax.rsqrt(var + EPS)
                + be.reshape(1, 1, 1, -1))

    y = jax.nn.relu(bn(conv3x3(x, params["w1"], params["b1"]),
                       params["g1"], params["be1"]))
    y = bn(conv3x3(y, params["w2"], params["b2"]), params["g2"], params["be2"])
    if use_1x1conv:
        xres = (jnp.einsum("nhwc,cd->nhwd", x, params["w3"])
                + params["b3"].reshape(1, 1, 1, -1))
    else:
        xres = x
    out = jax.nn.relu(y + xres)
    return jnp.transpose(out, (0, 3, 1, 2))


def make_params(key, cin, cout):
    ks = jax.random.split(key, 6)
    return {
        "w1": jax.random.normal(ks[0], (3, 3, cin, cout), jnp.float32) * 0.1,
        "b1": jax.random.normal(ks[1], (1, cout), jnp.float32) * 0.1,
        "w2": jax.random.normal(ks[2], (3, 3, cout, cout), jnp.float32) * 0.1,
        "b2": jax.random.normal(ks[3], (1, cout), jnp.float32) * 0.1,
        "w3": jax.random.normal(ks[4], (cin, cout), jnp.float32) * 0.1,
        "b3": jax.random.normal(ks[5], (1, cout), jnp.float32) * 0.1,
        # BatchNorm affine params at PyTorch init values.
        "g1": jnp.ones((1, cout), jnp.float32),
        "be1": jnp.zeros((1, cout), jnp.float32),
        "g2": jnp.ones((1, cout), jnp.float32),
        "be2": jnp.zeros((1, cout), jnp.float32),
    }


if __name__ == "__main__":
    key = jax.random.PRNGKey(0)
    kx, kp1, kp2 = jax.random.split(key, 3)

    N, H, Wd = 2, 16, 16

    # Case 1: channel-changing block with 1x1 projection (Cin=4 -> Cout=8).
    x1 = jax.random.normal(kx, (N, 4, H, Wd), jnp.float32)
    p1 = make_params(kp1, 4, 8)
    out1 = jax.block_until_ready(residual_forward(x1, p1, use_1x1conv=True))
    ref1 = _reference(x1, p1, use_1x1conv=True)

    # Case 2: identity shortcut (Cin = Cout = 8).
    x2 = jax.random.normal(kx, (N, 8, H, Wd), jnp.float32)
    p2 = make_params(kp2, 8, 8)
    out2 = jax.block_until_ready(residual_forward(x2, p2, use_1x1conv=False))
    ref2 = _reference(x2, p2, use_1x1conv=False)

    assert out1.shape == (N, 8, H, Wd) and out2.shape == (N, 8, H, Wd)
    assert jnp.allclose(out1, ref1, atol=2e-4, rtol=2e-4), "mismatch case 1"
    assert jnp.allclose(out2, ref2, atol=2e-4, rtol=2e-4), "mismatch case 2"

    print("KERNEL_OK")
</pallas_src>

<mosaic_0001>
module attributes {stable_mosaic.version = 11 : i64} {
  func.func @_residual_kernel(%arg0: memref<32x64xf32, #tpu.memory_space<vmem>>, %arg1: memref<3x64x128xf32, #tpu.memory_space<vmem>>, %arg2: memref<3x128x128xf32, #tpu.memory_space<vmem>>, %arg3: memref<64x128xf32, #tpu.memory_space<vmem>>, %arg4: memref<1x128xf32, #tpu.memory_space<vmem>>, %arg5: memref<1x128xf32, #tpu.memory_space<vmem>>, %arg6: memref<1x128xf32, #tpu.memory_space<vmem>>, %arg7: memref<1x128xf32, #tpu.memory_space<vmem>>, %arg8: memref<1x128xf32, #tpu.memory_space<vmem>>, %arg9: memref<32x128xf32, #tpu.memory_space<vmem>>) attributes {dimension_semantics = [], scalar_prefetch = 0 : i64, scratch_operands = 0 : i64, tpu.core_type = #tpu.core_type<tc>} {
    %c0 = arith.constant 0 : index
    %c0_0 = arith.constant 0 : index
    %0 = vector.load %arg0[%c0, %c0_0] : memref<32x64xf32, #tpu.memory_space<vmem>>, vector<32x64xf32>
    %1 = tpu.iota {dimensions = array<i32: 0>} : vector<32x64xi32>
    %c16_i32 = arith.constant 16 : i32
    %c0_i32 = arith.constant 0 : i32
    %2 = arith.cmpi eq, %c16_i32, %c0_i32 : i32
    %c1_i32 = arith.constant 1 : i32
    %3 = arith.select %2, %c1_i32, %c16_i32 : i32
    %4 = vector.broadcast %3 : i32 to vector<32x64xi32>
    %5 = arith.remsi %1, %4 : vector<32x64xi32>
    %c0_i32_1 = arith.constant 0 : i32
    %6 = vector.broadcast %c0_i32_1 : i32 to vector<32x64xi32>
    %7 = arith.cmpi ne, %5, %6 : vector<32x64xi32>
    %c0_i32_2 = arith.constant 0 : i32
    %8 = vector.broadcast %c0_i32_2 : i32 to vector<32x64xi32>
    %9 = arith.cmpi slt, %5, %8 : vector<32x64xi32>
    %c0_i32_3 = arith.constant 0 : i32
    %10 = arith.cmpi slt, %3, %c0_i32_3 : i32
    %11 = vector.broadcast %10 : i1 to vector<32x64xi1>
    %12 = vector.broadcast %11 : vector<32x64xi1> to vector<32x64xi1>
    %13 = arith.xori %9, %12 : vector<32x64xi1>
    %14 = arith.andi %13, %7 : vector<32x64xi1>
    %15 = vector.broadcast %3 : i32 to vector<32x64xi32>
    %16 = arith.addi %5, %15 : vector<32x64xi32>
    %17 = arith.select %14, %16, %5 : vector<32x64xi1>, vector<32x64xi32>
    %c1_i32_4 = arith.constant 1 : i32
    %18 = tpu.dynamic_rotate %0 by %c1_i32_4 dim 0 : vector<32x64xf32>, i32 -> vector<32x64xf32>
    %c0_i32_5 = arith.constant 0 : i32
    %19 = vector.broadcast %c0_i32_5 : i32 to vector<32x64xi32>
    %20 = arith.cmpi eq, %17, %19 : vector<32x64xi32>
    %cst = arith.constant 0.000000e+00 : f32
    %21 = vector.broadcast %cst : f32 to vector<32x64xf32>
    %22 = arith.select %20, %21, %18 : vector<32x64xi1>, vector<32x64xf32>
    %c31_i32 = arith.constant 31 : i32
    %23 = tpu.dynamic_rotate %0 by %c31_i32 dim 0 : vector<32x64xf32>, i32 -> vector<32x64xf32>
    %c15_i32 = arith.constant 15 : i32
    %24 = vector.broadcast %c15_i32 : i32 to vector<32x64xi32>
    %25 = arith.cmpi eq, %17, %24 : vector<32x64xi32>
    %cst_6 = arith.constant 0.000000e+00 : f32
    %26 = vector.broadcast %cst_6 : f32 to vector<32x64xf32>
    %27 = arith.select %25, %26, %23 : vector<32x64xi1>, vector<32x64xf32>
    %c0_7 = arith.constant 0 : index
    %c0_8 = arith.constant 0 : index
    %c0_9 = arith.constant 0 : index
    %28 = vector.load %arg1[%c0_7, %c0_8, %c0_9] : memref<3x64x128xf32, #tpu.memory_space<vmem>>, vector<1x64x128xf32>
    %29 = vector.shape_cast %28 : vector<1x64x128xf32> to vector<64x128xf32>
    %cst_10 = arith.constant dense<0.000000e+00> : vector<32x128xf32>
    %30 = tpu.matmul %22, %29, %cst_10 {dimension_numbers = #tpu.dot_dimension_numbers<[1], [0], [0], [1], [0, 0, 1, 1], [], []>} : vector<32x64xf32>, vector<64x128xf32>, vector<32x128xf32> -> vector<32x128xf32>
    %c1 = arith.constant 1 : index
    %c0_11 = arith.constant 0 : index
    %c0_12 = arith.constant 0 : index
    %31 = vector.load %arg1[%c1, %c0_11, %c0_12] : memref<3x64x128xf32, #tpu.memory_space<vmem>>, vector<1x64x128xf32>
    %32 = vector.shape_cast %31 : vector<1x64x128xf32> to vector<64x128xf32>
    %cst_13 = arith.constant dense<0.000000e+00> : vector<32x128xf32>
    %33 = tpu.matmul %0, %32, %cst_13 {dimension_numbers = #tpu.dot_dimension_numbers<[1], [0], [0], [1], [0, 0, 1, 1], [], []>} : vector<32x64xf32>, vector<64x128xf32>, vector<32x128xf32> -> vector<32x128xf32>
    %34 = arith.addf %30, %33 : vector<32x128xf32>
    %c2 = arith.constant 2 : index
    %c0_14 = arith.constant 0 : index
    %c0_15 = arith.constant 0 : index
    %35 = vector.load %arg1[%c2, %c0_14, %c0_15] : memref<3x64x128xf32, #tpu.memory_space<vmem>>, vector<1x64x128xf32>
    %36 = vector.shape_cast %35 : vector<1x64x128xf32> to vector<64x128xf32>
    %cst_16 = arith.constant dense<0.000000e+00> : vector<32x128xf32>
    %37 = tpu.matmul %27, %36, %cst_16 {dimension_numbers = #tpu.dot_dimension_numbers<[1], [0], [0], [1], [0, 0, 1, 1], [], []>} : vector<32x64xf32>, vector<64x128xf32>, vector<32x128xf32> -> vector<32x128xf32>
    %38 = arith.addf %34, %37 : vector<32x128xf32>
    %cst_17 = arith.constant dense<0.000000e+00> : vector<128xf32>
    %39 = vector.multi_reduction <add>, %38, %cst_17 [0] : vector<32x128xf32> to vector<128xf32>
    %40 = vector.shape_cast %39 : vector<128xf32> to vector<1x128xf32>
    %c8_i32 = arith.constant 8 : i32
    %41 = tpu.dynamic_rotate %40 by %c8_i32 dim 1 : vector<1x128xf32>, i32 -> vector<1x128xf32>
    %42 = arith.addf %40, %41 : vector<1x128xf32>
    %c16_i32_18 = arith.constant 16 : i32
    %43 = tpu.dynamic_rotate %42 by %c16_i32_18 dim 1 : vector<1x128xf32>, i32 -> vector<1x128xf32>
    %44 = arith.addf %42, %43 : vector<1x128xf32>
    %c32_i32 = arith.constant 32 : i32
    %45 = tpu.dynamic_rotate %44 by %c32_i32 dim 1 : vector<1x128xf32>, i32 -> vector<1x128xf32>
    %46 = arith.addf %44, %45 : vector<1x128xf32>
    %c64_i32 = arith.constant 64 : i32
    %47 = tpu.dynamic_rotate %46 by %c64_i32 dim 1 : vector<1x128xf32>, i32 -> vector<1x128xf32>
    %48 = arith.addf %46, %47 : vector<1x128xf32>
    %cst_19 = arith.constant 0.001953125 : f32
    %49 = vector.broadcast %cst_19 : f32 to vector<1x128xf32>
    %50 = arith.mulf %48, %49 : vector<1x128xf32>
    %51 = arith.mulf %38, %38 : vector<32x128xf32>
    %cst_20 = arith.constant dense<0.000000e+00> : vector<128xf32>
    %52 = vector.multi_reduction <add>, %51, %cst_20 [0] : vector<32x128xf32> to vector<128xf32>
    %53 = vector.shape_cast %52 : vector<128xf32> to vector<1x128xf32>
    %c8_i32_21 = arith.constant 8 : i32
    %54 = tpu.dynamic_rotate %53 by %c8_i32_21 dim 1 : vector<1x128xf32>, i32 -> vector<1x128xf32>
    %55 = arith.addf %53, %54 : vector<1x128xf32>
    %c16_i32_22 = arith.constant 16 : i32
    %56 = tpu.dynamic_rotate %55 by %c16_i32_22 dim 1 : vector<1x128xf32>, i32 -> vector<1x128xf32>
    %57 = arith.addf %55, %56 : vector<1x128xf32>
    %c32_i32_23 = arith.constant 32 : i32
    %58 = tpu.dynamic_rotate %57 by %c32_i32_23 dim 1 : vector<1x128xf32>, i32 -> vector<1x128xf32>
    %59 = arith.addf %57, %58 : vector<1x128xf32>
    %c64_i32_24 = arith.constant 64 : i32
    %60 = tpu.dynamic_rotate %59 by %c64_i32_24 dim 1 : vector<1x128xf32>, i32 -> vector<1x128xf32>
    %61 = arith.addf %59, %60 : vector<1x128xf32>
    %cst_25 = arith.constant 0.001953125 : f32
    %62 = vector.broadcast %cst_25 : f32 to vector<1x128xf32>
    %63 = arith.mulf %61, %62 : vector<1x128xf32>
    %64 = arith.mulf %50, %50 : vector<1x128xf32>
    %65 = arith.subf %63, %64 : vector<1x128xf32>
    %c0_26 = arith.constant 0 : index
    %c0_27 = arith.constant 0 : index
    %66 = vector.load %arg5[%c0_26, %c0_27] : memref<1x128xf32, #tpu.memory_space<vmem>>, vector<1x128xf32>
    %cst_28 = arith.constant 9.99999974E-6 : f32
    %67 = vector.broadcast %cst_28 : f32 to vector<1x128xf32>
    %68 = arith.addf %65, %67 : vector<1x128xf32>
    %69 = math.rsqrt %68 : vector<1x128xf32>
    %70 = arith.mulf %66, %69 : vector<1x128xf32>
    %c0_29 = arith.constant 0 : index
    %c0_30 = arith.constant 0 : index
    %71 = vector.load %arg6[%c0_29, %c0_30] : memref<1x128xf32, #tpu.memory_space<vmem>>, vector<1x128xf32>
    %72 = arith.mulf %50, %70 : vector<1x128xf32>
    %73 = arith.subf %71, %72 : vector<1x128xf32>
    %74 = vector.broadcast %70 : vector<1x128xf32> to vector<32x128xf32>
    %75 = arith.mulf %38, %74 : vector<32x128xf32>
    %76 = vector.broadcast %73 : vector<1x128xf32> to vector<32x128xf32>
    %77 = arith.addf %75, %76 : vector<32x128xf32>
    %cst_31 = arith.constant 0.000000e+00 : f32
    %78 = vector.broadcast %cst_31 : f32 to vector<32x128xf32>
    %79 = arith.maximumf %77, %78 : vector<32x128xf32>
    %80 = tpu.iota {dimensions = array<i32: 0>} : vector<32x128xi32>
    %c16_i32_32 = arith.constant 16 : i32
    %c0_i32_33 = arith.constant 0 : i32
    %81 = arith.cmpi eq, %c16_i32_32, %c0_i32_33 : i32
    %c1_i32_34 = arith.constant 1 : i32
    %82 = arith.select %81, %c1_i32_34, %c16_i32_32 : i32
    %83 = vector.broadcast %82 : i32 to vector<32x128xi32>
    %84 = arith.remsi %80, %83 : vector<32x128xi32>
    %c0_i32_35 = arith.constant 0 : i32
    %85 = vector.broadcast %c0_i32_35 : i32 to vector<32x128xi32>
    %86 = arith.cmpi ne, %84, %85 : vector<32x128xi32>
    %c0_i32_36 = arith.constant 0 : i32
    %87 = vector.broadcast %c0_i32_36 : i32 to vector<32x128xi32>
    %88 = arith.cmpi slt, %84, %87 : vector<32x128xi32>
    %c0_i32_37 = arith.constant 0 : i32
    %89 = arith.cmpi slt, %82, %c0_i32_37 : i32
    %90 = vector.broadcast %89 : i1 to vector<32x128xi1>
    %91 = vector.broadcast %90 : vector<32x128xi1> to vector<32x128xi1>
    %92 = arith.xori %88, %91 : vector<32x128xi1>
    %93 = arith.andi %92, %86 : vector<32x128xi1>
    %94 = vector.broadcast %82 : i32 to vector<32x128xi32>
    %95 = arith.addi %84, %94 : vector<32x128xi32>
    %96 = arith.select %93, %95, %84 : vector<32x128xi1>, vector<32x128xi32>
    %c1_i32_38 = arith.constant 1 : i32
    %97 = tpu.dynamic_rotate %79 by %c1_i32_38 dim 0 : vector<32x128xf32>, i32 -> vector<32x128xf32>
    %c0_i32_39 = arith.constant 0 : i32
    %98 = vector.broadcast %c0_i32_39 : i32 to vector<32x128xi32>
    %99 = arith.cmpi eq, %96, %98 : vector<32x128xi32>
    %cst_40 = arith.constant 0.000000e+00 : f32
    %100 = vector.broadcast %cst_40 : f32 to vector<32x128xf32>
    %101 = arith.select %99, %100, %97 : vector<32x128xi1>, vector<32x128xf32>
    %c31_i32_41 = arith.constant 31 : i32
    %102 = tpu.dynamic_rotate %79 by %c31_i32_41 dim 0 : vector<32x128xf32>, i32 -> vector<32x128xf32>
    %c15_i32_42 = arith.constant 15 : i32
    %103 = vector.broadcast %c15_i32_42 : i32 to vector<32x128xi32>
    %104 = arith.cmpi eq, %96, %103 : vector<32x128xi32>
    %cst_43 = arith.constant 0.000000e+00 : f32
    %105 = vector.broadcast %cst_43 : f32 to vector<32x128xf32>
    %106 = arith.select %104, %105, %102 : vector<32x128xi1>, vector<32x128xf32>
    %c0_44 = arith.constant 0 : index
    %c0_45 = arith.constant 0 : index
    %c0_46 = arith.constant 0 : index
    %107 = vector.load %arg2[%c0_44, %c0_45, %c0_46] : memref<3x128x128xf32, #tpu.memory_space<vmem>>, vector<1x128x128xf32>
    %108 = vector.shape_cast %107 : vector<1x128x128xf32> to vector<128x128xf32>
    %cst_47 = arith.constant dense<0.000000e+00> : vector<32x128xf32>
    %109 = tpu.matmul %101, %108, %cst_47 {dimension_numbers = #tpu.dot_dimension_numbers<[1], [0], [0], [1], [0, 0, 1, 1], [], []>} : vector<32x128xf32>, vector<128x128xf32>, vector<32x128xf32> -> vector<32x128xf32>
    %c1_48 = arith.constant 1 : index
    %c0_49 = arith.constant 0 : index
    %c0_50 = arith.constant 0 : index
    %110 = vector.load %arg2[%c1_48, %c0_49, %c0_50] : memref<3x128x128xf32, #tpu.memory_space<vmem>>, vector<1x128x128xf32>
    %111 = vector.shape_cast %110 : vector<1x128x128xf32> to vector<128x128xf32>
    %cst_51 = arith.constant dense<0.000000e+00> : vector<32x128xf32>
    %112 = tpu.matmul %79, %111, %cst_51 {dimension_numbers = #tpu.dot_dimension_numbers<[1], [0], [0], [1], [0, 0, 1, 1], [], []>} : vector<32x128xf32>, vector<128x128xf32>, vector<32x128xf32> -> vector<32x128xf32>
    %113 = arith.addf %109, %112 : vector<32x128xf32>
    %c2_52 = arith.constant 2 : index
    %c0_53 = arith.constant 0 : index
    %c0_54 = arith.constant 0 : index
    %114 = vector.load %arg2[%c2_52, %c0_53, %c0_54] : memref<3x128x128xf32, #tpu.memory_space<vmem>>, vector<1x128x128xf32>
    %115 = vector.shape_cast %114 : vector<1x128x128xf32> to vector<128x128xf32>
    %cst_55 = arith.constant dense<0.000000e+00> : vector<32x128xf32>
    %116 = tpu.matmul %106, %115, %cst_55 {dimension_numbers = #tpu.dot_dimension_numbers<[1], [0], [0], [1], [0, 0, 1, 1], [], []>} : vector<32x128xf32>, vector<128x128xf32>, vector<32x128xf32> -> vector<32x128xf32>
    %117 = arith.addf %113, %116 : vector<32x128xf32>
    %cst_56 = arith.constant dense<0.000000e+00> : vector<128xf32>
    %118 = vector.multi_reduction <add>, %117, %cst_56 [0] : vector<32x128xf32> to vector<128xf32>
    %119 = vector.shape_cast %118 : vector<128xf32> to vector<1x128xf32>
    %c8_i32_57 = arith.constant 8 : i32
    %120 = tpu.dynamic_rotate %119 by %c8_i32_57 dim 1 : vector<1x128xf32>, i32 -> vector<1x128xf32>
    %121 = arith.addf %119, %120 : vector<1x128xf32>
    %c16_i32_58 = arith.constant 16 : i32
    %122 = tpu.dynamic_rotate %121 by %c16_i32_58 dim 1 : vector<1x128xf32>, i32 -> vector<1x128xf32>
    %123 = arith.addf %121, %122 : vector<1x128xf32>
    %c32_i32_59 = arith.constant 32 : i32
    %124 = tpu.dynamic_rotate %123 by %c32_i32_59 dim 1 : vector<1x128xf32>, i32 -> vector<1x128xf32>
    %125 = arith.addf %123, %124 : vector<1x128xf32>
    %c64_i32_60 = arith.constant 64 : i32
    %126 = tpu.dynamic_rotate %125 by %c64_i32_60 dim 1 : vector<1x128xf32>, i32 -> vector<1x128xf32>
    %127 = arith.addf %125, %126 : vector<1x128xf32>
    %cst_61 = arith.constant 0.001953125 : f32
    %128 = vector.broadcast %cst_61 : f32 to vector<1x128xf32>
    %129 = arith.mulf %127, %128 : vector<1x128xf32>
    %130 = arith.mulf %117, %117 : vector<32x128xf32>
    %cst_62 = arith.constant dense<0.000000e+00> : vector<128xf32>
    %131 = vector.multi_reduction <add>, %130, %cst_62 [0] : vector<32x128xf32> to vector<128xf32>
    %132 = vector.shape_cast %131 : vector<128xf32> to vector<1x128xf32>
    %c8_i32_63 = arith.constant 8 : i32
    %133 = tpu.dynamic_rotate %132 by %c8_i32_63 dim 1 : vector<1x128xf32>, i32 -> vector<1x128xf32>
    %134 = arith.addf %132, %133 : vector<1x128xf32>
    %c16_i32_64 = arith.constant 16 : i32
    %135 = tpu.dynamic_rotate %134 by %c16_i32_64 dim 1 : vector<1x128xf32>, i32 -> vector<1x128xf32>
    %136 = arith.addf %134, %135 : vector<1x128xf32>
    %c32_i32_65 = arith.constant 32 : i32
    %137 = tpu.dynamic_rotate %136 by %c32_i32_65 dim 1 : vector<1x128xf32>, i32 -> vector<1x128xf32>
    %138 = arith.addf %136, %137 : vector<1x128xf32>
    %c64_i32_66 = arith.constant 64 : i32
    %139 = tpu.dynamic_rotate %138 by %c64_i32_66 dim 1 : vector<1x128xf32>, i32 -> vector<1x128xf32>
    %140 = arith.addf %138, %139 : vector<1x128xf32>
    %cst_67 = arith.constant 0.001953125 : f32
    %141 = vector.broadcast %cst_67 : f32 to vector<1x128xf32>
    %142 = arith.mulf %140, %141 : vector<1x128xf32>
    %143 = arith.mulf %129, %129 : vector<1x128xf32>
    %144 = arith.subf %142, %143 : vector<1x128xf32>
    %c0_68 = arith.constant 0 : index
    %c0_69 = arith.constant 0 : index
    %145 = vector.load %arg7[%c0_68, %c0_69] : memref<1x128xf32, #tpu.memory_space<vmem>>, vector<1x128xf32>
    %cst_70 = arith.constant 9.99999974E-6 : f32
    %146 = vector.broadcast %cst_70 : f32 to vector<1x128xf32>
    %147 = arith.addf %144, %146 : vector<1x128xf32>
    %148 = math.rsqrt %147 : vector<1x128xf32>
    %149 = arith.mulf %145, %148 : vector<1x128xf32>
    %c0_71 = arith.constant 0 : index
    %c0_72 = arith.constant 0 : index
    %150 = vector.load %arg8[%c0_71, %c0_72] : memref<1x128xf32, #tpu.memory_space<vmem>>, vector<1x128xf32>
    %151 = arith.mulf %129, %149 : vector<1x128xf32>
    %152 = arith.subf %150, %151 : vector<1x128xf32>
    %153 = vector.broadcast %149 : vector<1x128xf32> to vector<32x128xf32>
    %154 = arith.mulf %117, %153 : vector<32x128xf32>
    %155 = vector.broadcast %152 : vector<1x128xf32> to vector<32x128xf32>
    %156 = arith.addf %154, %155 : vector<32x128xf32>
    %c0_73 = arith.constant 0 : index
    %c0_74 = arith.constant 0 : index
    %157 = vector.load %arg3[%c0_73, %c0_74] : memref<64x128xf32, #tpu.memory_space<vmem>>, vector<64x128xf32>
    %cst_75 = arith.constant dense<0.000000e+00> : vector<32x128xf32>
    %158 = tpu.matmul %0, %157, %cst_75 {dimension_numbers = #tpu.dot_dimension_numbers<[1], [0], [0], [1], [0, 0, 1, 1], [], []>} : vector<32x64xf32>, vector<64x128xf32>, vector<32x128xf32> -> vector<32x128xf32>
    %c0_76 = arith.constant 0 : index
    %c0_77 = arith.constant 0 : index
    %159 = vector.load %arg4[%c0_76, %c0_77] : memref<1x128xf32, #tpu.memory_space<vmem>>, vector<1x128xf32>
    %160 = vector.broadcast %159 : vector<1x128xf32> to vector<32x128xf32>
    %161 = arith.addf %158, %160 : vector<32x128xf32>
    %162 = arith.addf %156, %161 : vector<32x128xf32>
    %cst_78 = arith.constant 0.000000e+00 : f32
    %163 = vector.broadcast %cst_78 : f32 to vector<32x128xf32>
    %164 = arith.maximumf %162, %163 : vector<32x128xf32>
    %c0_79 = arith.constant 0 : index
    %c0_80 = arith.constant 0 : index
    %165 = vector.load %arg9[%c0_79, %c0_80] : memref<32x128xf32, #tpu.memory_space<vmem>>, vector<32x128xf32>
    tpu.vector_store %arg9[%c0_79, %c0_80], %164 {strides = array<i32>} : memref<32x128xf32, #tpu.memory_space<vmem>>, vector<32x128xf32>,
    return
  }
}

</mosaic_0001>

<bundles_post_ra>
// kernel: tpu_custom_call.1
= control target key start
LH: loop header
LB: loop body
LE: loop exit
PB: predicated region body
PF: predicated region fallthrough
CT: control target
= control target key end

     0   :  { %14 = vsyncpa [#allocation3], 0  ;;  %s2122_s0 = inlined_call_operand.hbm [shape: f32[32,64], index: 0, kind: input, shape index: {}]   ;;  %s2123_s1 = inlined_call_operand.hbm [shape: f32[3,64,128], index: 1, kind: input, shape index: {}]   ;;  %s2124_s2 = inlined_call_operand.hbm [shape: f32[3,128,128], index: 2, kind: input, shape index: {}]   ;;  %s2125_s3 = inlined_call_operand.hbm [shape: f32[64,128], index: 3, kind: input, shape index: {}]   ;;  %s2126_s4 = inlined_call_operand.vmem [shape: f32[1,128], index: 4, kind: input, shape index: {}]   ;;  %s2127_s5 = inlined_call_operand.vmem [shape: f32[1,128], index: 5, kind: input, shape index: {}]   ;;  %s2128_s6 = inlined_call_operand.vmem [shape: f32[1,128], index: 6, kind: input, shape index: {}]   ;;  %s2129_s7 = inlined_call_operand.vmem [shape: f32[1,128], index: 7, kind: input, shape index: {}]   ;;  %s2130_s8 = inlined_call_operand.vmem [shape: f32[1,128], index: 8, kind: input, shape index: {}]   ;;  %s2131_s9 = inlined_call_operand.hbm [shape: f32[32,128], index: 9, kind: output, shape index: {}]  }
   0x1   :  { %15 = vsyncpa [#allocation6], 0 }
   0x2   :  { %16 = vsyncpa [#allocation9], 0 }
   0x3   :  { %17 = vsyncpa [#allocation4], 0  ;;  %s1766_s30 = smov [#allocation5]   ;;  %s1767_s11 = smov [#allocation2]  }
   0x4   :  { %s35_s10 = sshll.u32 %s1766_s30, 4  ;;  %s23_s12 = sshll.u32 %s1767_s11, 4  ;;  %s36_s10 = int_to_ptr.vmem [resolvable:$true] %s35_s10  ;;  %s1826_s12 = int_to_ptr.vmem [resolvable:$true] %s23_s12 }
   0x5   :  { %s1648_s15 = scalar_lea.hbm %s2123_s1, 3072 }
   0x6   :  { %p1649_p0 = scmp.ne.s32.totalorder %s2123_s1, %s1648_s15  ;;  %p1652_p1 = scmp.lt.u32.totalorder %s1648_s15, %s2123_s1 }
   0x8   :  { %p1654_p2 = pnand %p1652_p1, %p1649_p0 }
   0xa   :  { %1657 = shalt.err (!%p1654_p2)
}
   0xb   :  { %s1658_s20 = scalar_lea.vmem %s36_s10, 3072  ;;  %p1663_p4 = scmp.lt.s32.totalorder %s36_s10, %s36_s10 }
   0xc   :  { %p1659_p3 = scmp.ne.s32.totalorder %s36_s10, %s1658_s20  ;;  %p1664_p5 = scmp.lt.s32.totalorder %s1658_s20, %s1658_s20 }
   0xe   :  { %p1665_p6 = por %p1664_p5, %p1663_p4 }
  0x10   :  { %p1666_p7 = pnand %p1665_p6, %p1659_p3 }
  0x12   :  { %1669 = shalt.err (!%p1666_p7)
}
  0x13   :  { %s1768_s21 = smov 128   ;;  %s1769_s22 = smov 8  }
  0x14   :  { %41 = dma.hbm_to_vmem [thread:$0]  %s2123_s1, 3072, %s36_s10, [#allocation6], %s1768_s21, %s1768_s21, %s1769_s22  }
  0x15   :  { %s1670_s27 = scalar_lea.hbm %s2122_s0, 512 }
  0x16   :  { %p1671_p8 = scmp.ne.s32.totalorder %s2122_s0, %s1670_s27  ;;  %p1674_p9 = scmp.lt.u32.totalorder %s1670_s27, %s2122_s0 }
  0x18   :  { %p1676_p10 = pnand %p1674_p9, %p1671_p8 }
  0x1a   :  { %1679 = shalt.err (!%p1676_p10)
}
  0x1b   :  { %s1680_s13 = scalar_lea.vmem %s1826_s12, 512  ;;  %p1685_p12 = scmp.lt.s32.totalorder %s1826_s12, %s1826_s12 }
  0x1c   :  { %p1681_p11 = scmp.ne.s32.totalorder %s1826_s12, %s1680_s13  ;;  %p1686_p13 = scmp.lt.s32.totalorder %s1680_s13, %s1680_s13 }
  0x1e   :  { %p1687_p0 = por %p1686_p13, %p1685_p12 }
  0x20   :  { %p1688_p1 = pnand %p1687_p0, %p1681_p11 }
  0x22   :  { %1691 = shalt.err (!%p1688_p1)
}
  0x23   :  { %29 = dma.hbm_to_vmem [thread:$0]  %s2122_s0, 512, %s1826_s12, [#allocation3], %s1768_s21, %s1768_s21, %s1769_s22  }
  0x24   :  { %s1770_s14 = smov [#allocation7]   ;;  %s1771_s16 = smov [#allocation8]  }
  0x25   :  { %s47_s15 = sshll.u32 %s1770_s14, 4  ;;  %s59_s17 = sshll.u32 %s1771_s16, 4  ;;  %s48_s15 = int_to_ptr.vmem [resolvable:$true] %s47_s15  ;;  %s1863_s17 = int_to_ptr.vmem [resolvable:$true] %s59_s17 }
  0x26   :  { %s1692_s20 = scalar_lea.hbm %s2124_s2, 6144 }
  0x27   :  { %p1693_p2 = scmp.ne.s32.totalorder %s2124_s2, %s1692_s20  ;;  %p1696_p3 = scmp.lt.u32.totalorder %s1692_s20, %s2124_s2 }
  0x29   :  { %p1698_p4 = pnand %p1696_p3, %p1693_p2 }
  0x2b   :  { %1701 = shalt.err (!%p1698_p4)
}
  0x2c   :  { %s1702_s0 = scalar_lea.vmem %s48_s15, 6144  ;;  %p1707_p6 = scmp.lt.s32.totalorder %s48_s15, %s48_s15 }
  0x2d   :  { %p1703_p5 = scmp.ne.s32.totalorder %s48_s15, %s1702_s0  ;;  %p1708_p7 = scmp.lt.s32.totalorder %s1702_s0, %s1702_s0 }
  0x2f   :  { %p1709_p8 = por %p1708_p7, %p1707_p6 }
  0x31   :  { %p1710_p9 = pnand %p1709_p8, %p1703_p5 }
  0x33   :  { %1713 = shalt.err (!%p1710_p9)
}
  0x34   :  { %53 = dma.hbm_to_vmem [thread:$0]  %s2124_s2, 6144, %s48_s15, [#allocation6], %s1768_s21, %s1768_s21, %s1769_s22  }
  0x35   :  { %s1714_s30 = scalar_lea.hbm %s2125_s3, 1024 }
  0x36   :  { %p1715_p10 = scmp.ne.s32.totalorder %s2125_s3, %s1714_s30  ;;  %p1718_p11 = scmp.lt.u32.totalorder %s1714_s30, %s2125_s3 }
  0x38   :  { %p1720_p12 = pnand %p1718_p11, %p1715_p10 }
  0x3a   :  { %1723 = shalt.err (!%p1720_p12)
}
  0x3b   :  { %s1724_s14 = scalar_lea.vmem %s1863_s17, 1024  ;;  %p1729_p0 = scmp.lt.s32.totalorder %s1863_s17, %s1863_s17 }
  0x3c   :  { %p1725_p13 = scmp.ne.s32.totalorder %s1863_s17, %s1724_s14  ;;  %p1730_p1 = scmp.lt.s32.totalorder %s1724_s14, %s1724_s14 }
  0x3e   :  { %p1731_p2 = por %p1730_p1, %p1729_p0 }
  0x40   :  { %p1732_p3 = pnand %p1731_p2, %p1725_p13 }
  0x42   :  { %1735 = shalt.err (!%p1732_p3)
}
  0x43   :  { %65 = dma.hbm_to_vmem [thread:$0]  %s2125_s3, 1024, %s1863_s17, [#allocation9], %s1768_s21, %s1768_s21, %s1769_s22  }
  0x44   :  { %1758 = dma.done.wait [#allocation3], 512  }
  0x45   :  { %1759 = vsyncadd [#allocation3], 4294966784 }
  0x46   :  { %1760 = dma.done.wait [#allocation6], 9216  }
  0x47   :  { %1761 = vsyncadd [#allocation6], 4294958080 }
  0x48   :  { %1762 = dma.done.wait [#allocation9], 1024  }
  0x49   :  { %1763 = vsyncadd [#allocation9], 4294966272  ;;  %v188_v0 = vld [vmem:[#allocation5 + $0x40] sm:$0xff]  ;;  %v189_v1 = vld [vmem:[#allocation5 + $0x48] sm:$0xff]  ;;  %vm196_vm0 = vcmask 523264   ;;  %v92_v12 = vlaneseq  ;;  %s1772_s3 = smov 16  }
  0x4a   :  { %v190_v2 = vld [vmem:[#allocation5 + $0x50] sm:$0xff]  ;;  %v1458_v3 = vpack.c.bf16 %v189_v1, %v188_v0  ;;  %v191_v4 = vld [vmem:[#allocation5 + $0x58] sm:$0xff]  ;;  %v192_v6 = vld [vmem:[#allocation5 + $0x60] sm:$0xff]  ;;  %s1773_s16 = smov 32   ;;  %s1774_s17 = smov 64  }
  0x4b   :  { %v1462_v5 = vpack.c.bf16 %v191_v4, %v190_v2  ;;  %v193_v7 = vld [vmem:[#allocation5 + $0x68] sm:$0xff]  ;;  %v1900_v8 = vld [vmem:[#allocation2] sm:$0xff]  ;;  %v194_v10 = vld [vmem:[#allocation5 + $0x70] sm:$0xff]  ;;  %v1904_v16 = vshrl.u32 %v92_v12, 7 }
  0x4c   :  { %1459 = vmatprep.subr.bf16.mxu0 %v1458_v3  ;;  %1272 = vmatprep.mubr.msk.f32.mxu0 %vm196_vm0, %v1900_v8  ;;  %v1466_v9 = vpack.c.bf16 %v193_v7, %v192_v6  ;;  %v195_v11 = vld [vmem:[#allocation5 + $0x78] sm:$0xff]  ;;  %v179_v14 = vld [vmem:[#allocation5] sm:$0xff]  ;;  %v180_v15 = vld [vmem:[#allocation5 + $0x8] sm:$0xff]  ;;  %v145_v19 = vrot.slane %v1900_v8, 7  ;;  %v162_v48 = vrot.slane %v1900_v8, 1 }
  0x4d   :  { %1461 = vmatpush3.bf16.msra.mxu0 %v1458_v3  ;;  %v1470_v13 = vpack.c.bf16 %v195_v11, %v194_v10  ;;  %v1906_v17 = vld [vmem:[#allocation2 + $0x18] sm:$0xff]  ;;  %v1474_v18 = vpack.c.bf16 %v180_v15, %v179_v14  ;;  %v181_v20 = vld [vmem:[#allocation5 + $0x10] sm:$0xff]  ;;  %v101_v23 = vand.u32 15, %v1904_v16  ;;  %vm149_vm1 = vcmp.lt.s32.totalorder %v1904_v16, 1  ;;  %v1912_v24 = vld [vmem:[#allocation2 + $0x8] sm:$0xff] }
  0x4e   :  { %1463 = vmatprep.subr.bf16.mxu0 %v1462_v5  ;;  %v182_v21 = vld [vmem:[#allocation5 + $0x18] sm:$0xff]  ;;  %v148_v22 = vrot.slane %v1906_v17, 7  ;;  %v1914_v26 = vld [vmem:[#allocation2 + $0x10] sm:$0xff]  ;;  %v183_v27 = vld [vmem:[#allocation5 + $0x20] sm:$0xff]  ;;  %v95_v35 = vadd.s32 16, %v1904_v16  ;;  %v146_v41 = vrot.slane %v1912_v24, 7 }
  0x4f   :  { %v1478_v25 = vpack.c.bf16 %v182_v21, %v181_v20  ;;  %v184_v28 = vld [vmem:[#allocation5 + $0x28] sm:$0xff]  ;;  %vm1918_vm2 = vcmp.eq.s32.totalorder %v101_v23, 0  ;;  %v185_v33 = vld [vmem:[#allocation5 + $0x30] sm:$0xff]  ;;  %v186_v34 = vld [vmem:[#allocation5 + $0x38] sm:$0xff]  ;;  %v147_v37 = vrot.slane %v1914_v26, 7  ;;  %v163_v49 = vrot.slane %v1912_v24, 1 }
  0x50   :  { %v153_v29 = vsel %vm149_vm1, %v148_v22, %v145_v19  ;;  %v1482_v31 = vpack.c.bf16 %v184_v28, %v183_v27  ;;  %v1486_v36 = vpack.c.bf16 %v186_v34, %v185_v33  ;;  %v392_v38 = vld [vmem:[#allocation5 + $0x80] sm:$0xff]  ;;  %v393_v39 = vld [vmem:[#allocation5 + $0x88] sm:$0xff]  ;;  %v115_v40 = vand.u32 15, %v95_v35  ;;  %v394_v43 = vld [vmem:[#allocation5 + $0x90] sm:$0xff] }
  0x51   :  { %1465 = vmatpush3.bf16.msra.mxu0 %v1462_v5  ;;  %v158_v32 = vsel %vm1918_vm2, 0.0, %v153_v29  ;;  %v1490_v42 = vpack.c.bf16 %v393_v39, %v392_v38  ;;  %v395_v44 = vld [vmem:[#allocation5 + $0x98] sm:$0xff]  ;;  %v151_v45 = vsel %vm149_vm1, %v146_v41, %v147_v37  ;;  %v152_v47 = vsel %vm149_vm1, %v145_v19, %v146_v41  ;;  %v396_v52 = vld [vmem:[#allocation5 + $0xa0] sm:$0xff]  ;;  %v397_v53 = vld [vmem:[#allocation5 + $0xa8] sm:$0xff] }
  0x52   :  { %1467 = vmatprep.subr.bf16.mxu0 %v1466_v9  ;;  %vm1936_vm3 = vcmp.eq.s32.totalorder %v115_v40, 0  ;;  %v1494_v50 = vpack.c.bf16 %v395_v44, %v394_v43  ;;  %vm166_vm4 = vcmp.lt.s32.totalorder %v1904_v16, 7  ;;  %v150_v54 = vsel %vm149_vm1, %v147_v37, %v148_v22  ;;  %v398_v58 = vld [vmem:[#allocation5 + $0xb0] sm:$0xff]  ;;  %v399_v59 = vld [vmem:[#allocation5 + $0xb8] sm:$0xff]  ;;  %vm1135_vm7 = vmneg %vm1918_vm2 }
  0x53   :  { %v160_v51 = vsel %vm1936_vm3, 0.0, %v151_v45  ;;  %v1498_v55 = vpack.c.bf16 %v397_v53, %v396_v52  ;;  %v169_v56 = vsel %vm166_vm4, %v162_v48, %v163_v49  ;;  %v94_v57 = vadd.s32 8, %v1904_v16  ;;  %v625_v52 = vld [vmem:[#allocation7 + $0x90] sm:$0xff]  ;;  %v626_v53 = vld [vmem:[#allocation7 + $0x98] sm:$0xff]  ;;  %vm1137_vm8 = vmneg %vm1936_vm3 }
  0x54   :  { %v164_v60 = vrot.slane %v1914_v26, 1  ;;  %v1502_v61 = vpack.c.bf16 %v399_v59, %v398_v58  ;;  %v96_v63 = vadd.s32 24, %v1904_v16  ;;  %v165_v0 = vrot.slane %v1906_v17, 1 }
  0x55   :  { %1469 = vmatpush3.bf16.msra.mxu0 %v1466_v9  ;;  %v108_v62 = vand.u32 15, %v94_v57 }
  0x56   :  { %1471 = vmatprep.subr.bf16.mxu0 %v1470_v13  ;;  %v168_v1 = vsel %vm166_vm4, %v163_v49, %v164_v60  ;;  %v122_v3 = vand.u32 15, %v96_v63  ;;  %v167_v5 = vsel %vm166_vm4, %v164_v60, %v165_v0  ;;  %v170_v6 = vsel %vm166_vm4, %v165_v0, %v162_v48  ;;  %v623_v49 = vld [vmem:[#allocation7 + $0x80] sm:$0xff]  ;;  %v629_v60 = vld [vmem:[#allocation7 + $0xb0] sm:$0xff] }
  0x57   :  { %vm1961_vm5 = vcmp.eq.s32.totalorder %v108_v62, 15 }
  0x58   :  { %v176_v4 = vsel %vm1961_vm5, 0.0, %v168_v1  ;;  %vm1971_vm6 = vcmp.eq.s32.totalorder %v122_v3, 15  ;;  %v631_v1 = vld [vmem:[#allocation7 + $0xc0] sm:$0xff]  ;;  %v632_v3 = vld [vmem:[#allocation7 + $0xc8] sm:$0xff]  ;;  %vm1139_vm9 = vmneg %vm1961_vm5 }
  0x59   :  { %1473 = vmatpush3.bf16.msra.mxu0 %v1470_v13  ;;  %v178_v9 = vsel %vm1971_vm6, 0.0, %v170_v6  ;;  %v634_v6 = vld [vmem:[#allocation7 + $0xd8] sm:$0xff]  ;;  %vm1141_vm10 = vmneg %vm1971_vm6 }
  0x5a   :  { %1475 = vmatprep.subr.bf16.mxu0 %v1474_v18 }
  0x5c   :  { %1273 = vmatmul.mubr.msk.f32.vlgmr.msra.gmra.mrb[0].mxu0 %vm196_vm0, %v1912_v24 }
  0x5d   :  { %1477 = vmatpush3.bf16.msra.mxu0 %v1474_v18  ;;  %1275 = vmatprep.mubr.msk.f32.mxu0 %vm196_vm0, %v1914_v26 }
  0x5e   :  { %1479 = vmatprep.subr.bf16.mxu0 %v1478_v25 }
  0x60   :  { %1276 = vmatmul.mubr.msk.f32.gmra.mrb[2].mxu0 %vm196_vm0, %v1906_v17 }
  0x61   :  { %1481 = vmatpush3.bf16.msra.mxu0 %v1478_v25  ;;  %1294 = vmatprep.mubr.msk.f32.mxu0 %vm196_vm0, %v158_v32 }
  0x62   :  { %1483 = vmatprep.subr.bf16.mxu0 %v1482_v31 }
  0x65   :  { %1485 = vmatpush3.bf16.msra.mxu0 %v1482_v31 }
  0x66   :  { %1487 = vmatprep.subr.bf16.mxu0 %v1486_v36 }
  0x69   :  { %1489 = vmatpush3.bf16.msra.mxu0 %v1486_v36 }
  0x6a   :  { %1491 = vmatprep.subr.bf16.mxu0 %v1490_v42 }
  0x6c   :  { %1295 = vmatmul.mubr.msk.f32.vlgmr.msra.gmra.mrb[0].mxu0 %vm196_vm0, %v152_v47 }
  0x6d   :  { %1493 = vmatpush3.bf16.msra.mxu0 %v1490_v42  ;;  %1297 = vmatprep.mubr.msk.f32.mxu0 %vm196_vm0, %v160_v51 }
  0x6e   :  { %1495 = vmatprep.subr.bf16.mxu0 %v1494_v50 }
  0x70   :  { %1298 = vmatmul.mubr.msk.f32.gmra.mrb[2].mxu0 %vm196_vm0, %v150_v54  ;;  %v1510_v54 = vpack.c.bf16 %v626_v53, %v625_v52  ;;  %v608_v53 = vld [vmem:[#allocation7 + $0x10] sm:$0xff] }
  0x71   :  { %1497 = vmatpush3.bf16.msra.mxu0 %v1494_v50  ;;  %1316 = vmatprep.mubr.msk.f32.mxu0 %vm196_vm0, %v169_v56  ;;  %v624_v50 = vld [vmem:[#allocation7 + $0x88] sm:$0xff] }
  0x72   :  { %1499 = vmatprep.subr.bf16.mxu0 %v1498_v55  ;;  %v1506_v51 = vpack.c.bf16 %v624_v50, %v623_v49  ;;  %v628_v56 = vld [vmem:[#allocation7 + $0xa8] sm:$0xff] }
  0x74   :  { %1507 = vmatprep.subr.bf16.mxu1 %v1506_v51 }
  0x75   :  { %1501 = vmatpush3.bf16.msra.mxu0 %v1498_v55  ;;  %1509 = vmatpush3.bf16.msra.mxu1 %v1506_v51  ;;  %v627_v55 = vld [vmem:[#allocation7 + $0xa0] sm:$0xff] }
  0x76   :  { %1503 = vmatprep.subr.bf16.mxu0 %v1502_v61  ;;  %1511 = vmatprep.subr.bf16.mxu1 %v1510_v54  ;;  %v1514_v57 = vpack.c.bf16 %v628_v56, %v627_v55 }
  0x79   :  { %1505 = vmatpush3.bf16.msra.mxu0 %v1502_v61  ;;  %1513 = vmatpush3.bf16.msra.mxu1 %v1510_v54  ;;  %v630_v61 = vld [vmem:[#allocation7 + $0xb8] sm:$0xff] }
  0x7a   :  { %1515 = vmatprep.subr.bf16.mxu1 %v1514_v57  ;;  %v1518_v62 = vpack.c.bf16 %v630_v61, %v629_v60  ;;  %v609_v54 = vld [vmem:[#allocation7 + $0x18] sm:$0xff]  ;;  %v611_v61 = vld [vmem:[#allocation7 + $0x28] sm:$0xff] }
  0x7b   :  { %v1542_v60 = vpack.c.bf16 %v609_v54, %v608_v53  ;;  %v821_v53 = vld [vmem:[#allocation7 + $0x158] sm:$0xff] }
  0x7c   :  { %1317 = vmatmul.mubr.msk.f32.vlgmr.msra.gmra.mrb[0].mxu0 %vm196_vm0, %v176_v4  ;;  %v1522_v4 = vpack.c.bf16 %v632_v3, %v631_v1 }
  0x7d   :  { %1319 = vmatprep.mubr.msk.f32.mxu0 %vm196_vm0, %v167_v5  ;;  %1517 = vmatpush3.bf16.msra.mxu1 %v1514_v57  ;;  %v633_v5 = vld [vmem:[#allocation7 + $0xd0] sm:$0xff] }
  0x7e   :  { %1519 = vmatprep.subr.bf16.mxu1 %v1518_v62 }
  0x80   :  { %1320 = vmatmul.mubr.msk.f32.gmra.mrb[2].mxu0 %vm196_vm0, %v178_v9  ;;  %v1526_v9 = vpack.c.bf16 %v634_v6, %v633_v5 }
  0x81   :  { %1452 = vmatprep.mubr.msk.f32.mxu0 %vm196_vm0, %v1900_v8  ;;  %1521 = vmatpush3.bf16.msra.mxu1 %v1518_v62 }
  0x82   :  { %1523 = vmatprep.subr.bf16.mxu1 %v1522_v4 }
  0x85   :  { %1525 = vmatpush3.bf16.msra.mxu1 %v1522_v4 }
  0x86   :  { %1527 = vmatprep.subr.bf16.mxu1 %v1526_v9 }
  0x89   :  { %1529 = vmatpush3.bf16.msra.mxu1 %v1526_v9 }
 0x14f   :  { %v1982_v10 = vpop.f32.mrb[0].mxu0 }
 0x150   :  { %v524_v11 = vmul.f32 %v1982_v10, %v1982_v10  ;;  %v1986_v12 = vpop.f32.mrb[1].mxu0 }
 0x151   :  { %v501_v13 = vadd.f32 %v1982_v10, %v1986_v12  ;;  %v523_v14 = vmul.f32 %v1986_v12, %v1986_v12 }
 0x153   :  { %v527_v15 = vadd.f32 %v524_v11, %v523_v14  ;;  %v1992_v18 = vpop.f32.mrb[2].mxu0  ;;  %v635_v11 = vld [vmem:[#allocation7 + $0xe0] sm:$0xff]  ;;  %v637_v14 = vld [vmem:[#allocation7 + $0xf0] sm:$0xff] }
 0x154   :  { %v1994_v19 = vpop.f32.mrb[3].mxu0  ;;  %v526_v21 = vmul.f32 %v1992_v18, %v1992_v18 }
 0x155   :  { %v502_v8 = vadd.f32 %v501_v13, %v1994_v19  ;;  %v525_v20 = vmul.f32 %v1994_v19, %v1994_v19  ;;  %v636_v13 = vld [vmem:[#allocation7 + $0xe8] sm:$0xff] }
 0x157   :  { %v503_v22 = vadd.f32 %v1992_v18, %v502_v8  ;;  %v528_v23 = vadd.f32 %v527_v15, %v525_v20  ;;  %v1530_v15 = vpack.c.bf16 %v636_v13, %v635_v11  ;;  %v638_v8 = vld [vmem:[#allocation7 + $0xf8] sm:$0xff] }
 0x158   :  { %v1534_v20 = vpack.c.bf16 %v638_v8, %v637_v14  ;;  %v613_v8 = vld [vmem:[#allocation7 + $0x38] sm:$0xff] }
 0x159   :  { %v504_v25 = vrot.slane %v503_v22, 4  ;;  %v529_v27 = vadd.f32 %v528_v23, %v526_v21  ;;  %1531 = vmatprep.subr.bf16.mxu1 %v1530_v15  ;;  %v606_v21 = vld [vmem:[#allocation7] sm:$0xff] }
 0x15a   :  { %1533 = vmatpush3.bf16.msra.mxu1 %v1530_v15  ;;  %v612_v15 = vld [vmem:[#allocation7 + $0x30] sm:$0xff] }
 0x15b   :  { %v505_v28 = vadd.f32 %v504_v25, %v503_v22  ;;  %v530_v29 = vrot.slane %v529_v27, 4  ;;  %1535 = vmatprep.subr.bf16.mxu1 %v1534_v20  ;;  %v607_v22 = vld [vmem:[#allocation7 + $0x8] sm:$0xff] }
 0x15c   :  { %v1538_v23 = vpack.c.bf16 %v607_v22, %v606_v21  ;;  %v1550_v21 = vpack.c.bf16 %v613_v8, %v612_v15  ;;  %v614_v22 = vld [vmem:[#allocation7 + $0x40] sm:$0xff] }
 0x15d   :  { %v506_v31 = vrot.slane %v505_v28, 2  ;;  %v531_v32 = vadd.f32 %v530_v29, %v529_v27 }
 0x15e   :  { %1537 = vmatpush3.bf16.msra.mxu1 %v1534_v20 }
 0x15f   :  { %v507_v33 = vadd.f32 %v506_v31, %v505_v28  ;;  %v532_v34 = vrot.slane %v531_v32, 2  ;;  %1539 = vmatprep.subr.bf16.mxu1 %v1538_v23 }
 0x161   :  { %v508_v35 = vrot.slane %v507_v33, 1  ;;  %v533_v36 = vadd.f32 %v532_v34, %v531_v32 }
 0x163   :  { %v509_v37 = vadd.f32 %v508_v35, %v507_v33  ;;  %v534_v38 = vrot.slane %v533_v36, 1 }
 0x165   :  { %510 = vrot.lane.b32.xlu0 %v509_v37, %s1769_s22  ;;  %v535_v39 = vadd.f32 %v534_v38, %v533_v36  ;;  %v551_v36 = vld [vmem:[%s2127_s5] sm:$0x1] }
 0x169   :  { %536 = vrot.lane.b32.xlu0 %v535_v39, %s1769_s22 }
 0x1d7   :  { %v511_v40 = vpop.permute.xlu0 %510 }
 0x1d8   :  { %v512_v41 = vadd.f32 %v511_v40, %v509_v37  ;;  %v2014_v37 = vsub.s32 0, %v1904_v16  ;;  %v555_v40 = vld [vmem:[%s2128_s6] sm:$0x1] }
 0x1da   :  { %513 = vrot.lane.b32.xlu1 %v512_v41, %s1772_s3 }
 0x1db   :  { %v537_v42 = vpop.permute.xlu0 %536 }
 0x1dc   :  { %v538_v43 = vadd.f32 %v537_v42, %v535_v39 }
 0x1de   :  { %539 = vrot.lane.b32.xlu1 %v538_v43, %s1772_s3 }
 0x24c   :  { %v514_v44 = vpop.permute.xlu1 %513 }
 0x24d   :  { %v515_v45 = vadd.f32 %v514_v44, %v512_v41 }
 0x24f   :  { %516 = vrot.lane.b32.xlu0 %v515_v45, %s1773_s16 }
 0x250   :  { %v540_v47 = vpop.permute.xlu1 %539 }
 0x251   :  { %v541_v48 = vadd.f32 %v540_v47, %v538_v43 }
 0x253   :  { %542 = vrot.lane.b32.xlu1 %v541_v48, %s1773_s16 }
 0x2c1   :  { %v517_v58 = vpop.permute.xlu0 %516 }
 0x2c2   :  { %v518_v59 = vadd.f32 %v517_v58, %v515_v45 }
 0x2c4   :  { %519 = vrot.lane.b32.xlu0 %v518_v59, %s1774_s17 }
 0x2c5   :  { %v543_v63 = vpop.permute.xlu1 %542 }
 0x2c6   :  { %v544_v0 = vadd.f32 %v543_v63, %v541_v48 }
 0x2c8   :  { %545 = vrot.lane.b32.xlu1 %v544_v0, %s1774_s17 }
 0x336   :  { %v520_v25 = vpop.permute.xlu0 %519 }
 0x337   :  { %v521_v27 = vadd.f32 %v520_v25, %v518_v59 }
 0x339   :  { %v522_v28 = vmul.f32 0.001953125, %v521_v27  ;;  %v616_v27 = vld [vmem:[#allocation7 + $0x50] sm:$0xff] }
 0x33a   :  { %v546_v29 = vpop.permute.xlu1 %545 }
 0x33b   :  { %v547_v31 = vadd.f32 %v546_v29, %v544_v0  ;;  %v549_v32 = vmul.f32 %v522_v28, %v522_v28 }
 0x33d   :  { %v548_v33 = vmul.f32 0.001953125, %v547_v31  ;;  %v618_v31 = vld [vmem:[#allocation7 + $0x60] sm:$0xff] }
 0x33f   :  { %v550_v34 = vsub.f32 %v548_v33, %v549_v32  ;;  %v619_v32 = vld [vmem:[#allocation7 + $0x68] sm:$0xff]  ;;  %v620_v33 = vld [vmem:[#allocation7 + $0x70] sm:$0xff] }
 0x340   :  { %v1562_v16 = vpack.c.bf16 %v619_v32, %v618_v31  ;;  %v995_v31 = vld [vmem:[#allocation8 + $0x18] sm:$0xff] }
 0x341   :  { %v552_v35 = vadd.f32 1e-05, %v550_v34  ;;  %v621_v34 = vld [vmem:[#allocation7 + $0x78] sm:$0xff] }
 0x343   :  { %1644 = vrsqrt.f32 %v552_v35  ;;  %v1566_v35 = vpack.c.bf16 %v621_v34, %v620_v33  ;;  %v997_v33 = vld [vmem:[#allocation8 + $0x28] sm:$0xff] }
 0x34d   :  { %v1645_v38 = vpop.eup %1644 }
 0x34e   :  { %v554_v39 = vmul.f32 %v1645_v38, %v551_v36  ;;  %v810_v36 = vld [vmem:[#allocation7 + $0x100] sm:$0xff]  ;;  %v811_v38 = vld [vmem:[#allocation7 + $0x108] sm:$0xff] }
 0x350   :  { %v556_v41 = vmul.f32 %v554_v39, %v522_v28  ;;  %v562_v42 = vrot.slane %v554_v39, %v2014_v37  ;;  %v617_v28 = vld [vmem:[#allocation7 + $0x58] sm:$0xff]  ;;  %v1570_v39 = vpack.c.bf16 %v811_v38, %v810_v36  ;;  %v998_v36 = vld [vmem:[#allocation8 + $0x30] sm:$0xff] }
 0x351   :  { %v1558_v29 = vpack.c.bf16 %v617_v28, %v616_v27  ;;  %v993_v27 = vld [vmem:[#allocation8 + $0x8] sm:$0xff]  ;;  %v994_v28 = vld [vmem:[#allocation8 + $0x10] sm:$0xff]  ;;  %v999_v38 = vld [vmem:[#allocation8 + $0x38] sm:$0xff] }
 0x352   :  { %v557_v43 = vsub.f32 %v555_v40, %v556_v41  ;;  %v564_v44 = vmul.f32 %v562_v42, %v1986_v12  ;;  %v565_v47 = vmul.f32 %v1982_v10, %v562_v42  ;;  %v566_v48 = vmul.f32 %v562_v42, %v1994_v19  ;;  %v610_v12 = vld [vmem:[#allocation7 + $0x20] sm:$0xff]  ;;  %v812_v40 = vld [vmem:[#allocation7 + $0x110] sm:$0xff]  ;;  %v813_v41 = vld [vmem:[#allocation7 + $0x118] sm:$0xff] }
 0x353   :  { %v567_v49 = vmul.f32 %v1992_v18, %v562_v42  ;;  %v1546_v5 = vpack.c.bf16 %v611_v61, %v610_v12  ;;  %v1574_v42 = vpack.c.bf16 %v813_v41, %v812_v40  ;;  %v1606_v32 = vpack.c.bf16 %v995_v31, %v994_v28 }
 0x354   :  { %v572_v45 = vrot.slane %v557_v43, %v2014_v37  ;;  %v814_v43 = vld [vmem:[#allocation7 + $0x120] sm:$0xff] }
 0x356   :  { %v574_v50 = vadd.f32 %v572_v45, %v564_v44  ;;  %v575_v51 = vadd.f32 %v572_v45, %v565_v47  ;;  %v576_v52 = vadd.f32 %v572_v45, %v566_v48  ;;  %v577_v55 = vadd.f32 %v572_v45, %v567_v49  ;;  %v815_v44 = vld [vmem:[#allocation7 + $0x128] sm:$0xff]  ;;  %v816_v47 = vld [vmem:[#allocation7 + $0x130] sm:$0xff]  ;;  %v817_v48 = vld [vmem:[#allocation7 + $0x138] sm:$0xff] }
 0x357   :  { %v1578_v45 = vpack.c.bf16 %v815_v44, %v814_v43  ;;  %v1582_v49 = vpack.c.bf16 %v817_v48, %v816_v47 }
 0x358   :  { %v578_v56 = vmax.f32 %v574_v50, 0.0  ;;  %v579_v57 = vmax.f32 %v575_v51, 0.0  ;;  %v580_v58 = vmax.f32 %v576_v52, 0.0  ;;  %v581_v59 = vmax.f32 %v577_v55, 0.0  ;;  %v818_v50 = vld [vmem:[#allocation7 + $0x140] sm:$0xff]  ;;  %v819_v51 = vld [vmem:[#allocation7 + $0x148] sm:$0xff] }
 0x359   :  { %v1586_v46 = vpack.c.bf16 %v819_v51, %v818_v50  ;;  %v820_v52 = vld [vmem:[#allocation7 + $0x150] sm:$0xff]  ;;  %v822_v55 = vld [vmem:[#allocation7 + $0x160] sm:$0xff] }
 0x35a   :  { %1354 = vmatprep.mubr.f32.mxu1 %v578_v56  ;;  %v583_v62 = vrot.slane %v579_v57, 7  ;;  %v596_v10 = vrot.slane %v580_v58, 1  ;;  %v582_v63 = vrot.slane %v578_v56, 7  ;;  %v585_v19 = vrot.slane %v581_v59, 7 }
 0x35b   :  { %1355 = vmatmul.mubr.f32.vlgmr.msra.gmra.mrb[0].mxu1 %v579_v57  ;;  %v584_v18 = vrot.slane %v580_v58, 7  ;;  %v594_v0 = vrot.slane %v578_v56, 1  ;;  %v595_v1 = vrot.slane %v579_v57, 1  ;;  %v597_v3 = vrot.slane %v581_v59, 1  ;;  %v823_v56 = vld [vmem:[#allocation7 + $0x168] sm:$0xff] }
 0x35c   :  { %1541 = vmatpush3.bf16.msra.mxu1 %v1538_v23  ;;  %1357 = vmatprep.mubr.f32.mxu1 %v580_v58  ;;  %v589_v4 = vsel %vm149_vm1, %v585_v19, %v582_v63  ;;  %v588_v6 = vsel %vm149_vm1, %v582_v63, %v583_v62  ;;  %v615_v23 = vld [vmem:[#allocation7 + $0x48] sm:$0xff]  ;;  %v1590_v54 = vpack.c.bf16 %v821_v53, %v820_v52  ;;  %v824_v58 = vld [vmem:[#allocation7 + $0x170] sm:$0xff] }
 0x35d   :  { %1543 = vmatprep.subr.bf16.mxu1 %v1542_v60  ;;  %v587_v9 = vsel %vm149_vm1, %v583_v62, %v584_v18  ;;  %v586_v11 = vsel %vm149_vm1, %v584_v18, %v585_v19  ;;  %v600_v13 = vsel %vm166_vm4, %v594_v0, %v595_v1  ;;  %v2039_v14 = vsel %vm166_vm4, %v595_v1, %v596_v10 }
 0x35e   :  { %v2043_v20 = vsel %vm166_vm4, %v596_v10, %v597_v3  ;;  %v2047_v30 = vsel %vm166_vm4, %v597_v3, %v594_v0  ;;  %v1554_v25 = vpack.c.bf16 %v615_v23, %v614_v22  ;;  %v1594_v57 = vpack.c.bf16 %v823_v56, %v822_v55 }
 0x35f   :  { %1358 = vmatmul.mubr.f32.gmra.mrb[2].mxu1 %v581_v59  ;;  %v825_v59 = vld [vmem:[#allocation7 + $0x178] sm:$0xff] }
 0x360   :  { %1545 = vmatpush3.bf16.msra.mxu1 %v1542_v60  ;;  %1392 = vmatprep.mubr.msk.f32.mxu1 %vm1135_vm7, %v589_v4  ;;  %v1598_v60 = vpack.c.bf16 %v825_v59, %v824_v58 }
 0x361   :  { %1547 = vmatprep.subr.bf16.mxu1 %v1546_v5 }
 0x364   :  { %1549 = vmatpush3.bf16.msra.mxu1 %v1546_v5 }
 0x365   :  { %1551 = vmatprep.subr.bf16.mxu1 %v1550_v21 }
 0x368   :  { %1553 = vmatpush3.bf16.msra.mxu1 %v1550_v21 }
 0x369   :  { %1555 = vmatprep.subr.bf16.mxu1 %v1554_v25 }
 0x36c   :  { %1557 = vmatpush3.bf16.msra.mxu1 %v1554_v25  ;;  %v992_v25 = vld [vmem:[#allocation8] sm:$0xff] }
 0x36d   :  { %1559 = vmatprep.subr.bf16.mxu1 %v1558_v29 }
 0x370   :  { %1561 = vmatpush3.bf16.msra.mxu1 %v1558_v29  ;;  %v1602_v29 = vpack.c.bf16 %v993_v27, %v992_v25 }
 0x371   :  { %1563 = vmatprep.subr.bf16.mxu1 %v1562_v16 }
 0x372   :  { %1603 = vmatprep.subr.bf16.mxu0 %v1602_v29 }
 0x373   :  { %1605 = vmatpush3.bf16.msra.mxu0 %v1602_v29 }
 0x374   :  { %1565 = vmatpush3.bf16.msra.mxu1 %v1562_v16  ;;  %v996_v16 = vld [vmem:[#allocation8 + $0x20] sm:$0xff]  ;;  %1607 = vmatprep.subr.bf16.mxu0 %v1606_v32 }
 0x375   :  { %1567 = vmatprep.subr.bf16.mxu1 %v1566_v35  ;;  %v1610_v34 = vpack.c.bf16 %v997_v33, %v996_v16 }
 0x377   :  { %1609 = vmatpush3.bf16.msra.mxu0 %v1606_v32 }
 0x378   :  { %1569 = vmatpush3.bf16.msra.mxu1 %v1566_v35  ;;  %1611 = vmatprep.subr.bf16.mxu0 %v1610_v34 }
 0x379   :  { %1571 = vmatprep.subr.bf16.mxu1 %v1570_v39 }
 0x37b   :  { %1393 = vmatmul.mubr.f32.vlgmr.msra.gmra.mrb[0].mxu1 %v588_v6  ;;  %1613 = vmatpush3.bf16.msra.mxu0 %v1610_v34 }
 0x37c   :  { %1395 = vmatprep.mubr.msk.f32.mxu1 %vm1137_vm8, %v587_v9  ;;  %1573 = vmatpush3.bf16.msra.mxu1 %v1570_v39 }
 0x37d   :  { %1575 = vmatprep.subr.bf16.mxu1 %v1574_v42 }
 0x37f   :  { %1396 = vmatmul.mubr.f32.gmra.mrb[2].mxu1 %v586_v11 }
 0x380   :  { %1577 = vmatpush3.bf16.msra.mxu1 %v1574_v42  ;;  %1430 = vmatprep.mubr.f32.mxu1 %v600_v13  ;;  %v1614_v42 = vpack.c.bf16 %v999_v38, %v998_v36 }
 0x381   :  { %1579 = vmatprep.subr.bf16.mxu1 %v1578_v45 }
 0x382   :  { %1615 = vmatprep.subr.bf16.mxu0 %v1614_v42 }
 0x383   :  { %1617 = vmatpush3.bf16.msra.mxu0 %v1614_v42 }
 0x384   :  { %1581 = vmatpush3.bf16.msra.mxu1 %v1578_v45 }
 0x385   :  { %1583 = vmatprep.subr.bf16.mxu1 %v1582_v49 }
 0x386   :  { %1453 = vmatmul.mubr.msk.f32.vlgmr.msra.gmra.mrb[4].mxu0 %vm196_vm0, %v1912_v24 }
 0x387   :  { %1455 = vmatprep.mubr.msk.f32.mxu0 %vm196_vm0, %v1914_v26 }
 0x388   :  { %1585 = vmatpush3.bf16.msra.mxu1 %v1582_v49 }
 0x389   :  { %1587 = vmatprep.subr.bf16.mxu1 %v1586_v46 }
 0x38a   :  { %1456 = vmatmul.mubr.msk.f32.gmra.mrb[6].mxu0 %vm196_vm0, %v1906_v17 }
 0x38c   :  { %1589 = vmatpush3.bf16.msra.mxu1 %v1586_v46 }
 0x38d   :  { %1591 = vmatprep.subr.bf16.mxu1 %v1590_v54 }
 0x390   :  { %1593 = vmatpush3.bf16.msra.mxu1 %v1590_v54 }
 0x391   :  { %1595 = vmatprep.subr.bf16.mxu1 %v1594_v57 }
 0x394   :  { %1597 = vmatpush3.bf16.msra.mxu1 %v1594_v57 }
 0x395   :  { %1599 = vmatprep.subr.bf16.mxu1 %v1598_v60 }
 0x398   :  { %1601 = vmatpush3.bf16.msra.mxu1 %v1598_v60 }
 0x39b   :  { %1431 = vmatmul.mubr.msk.f32.vlgmr.msra.gmra.mrb[0].mxu1 %vm1139_vm9, %v2039_v14 }
 0x39c   :  { %1433 = vmatprep.mubr.f32.mxu1 %v2043_v20 }
 0x39f   :  { %1434 = vmatmul.mubr.msk.f32.gmra.mrb[2].mxu1 %vm1141_vm10, %v2047_v30 }
 0x459   :  { %v1454_v24 = vpop.f32.mrb[4].mxu0 }
 0x45a   :  { %v1073_v26 = vpop.f32.mrb[5].mxu0 }
 0x45d   :  { %v1457_v46 = vpop.f32.mrb[6].mxu0 }
 0x45e   :  { %v1083_v17 = vpop.f32.mrb[7].mxu0 }
 0x46e   :  { %v2058_v12 = vpop.f32.mrb[0].mxu1 }
 0x46f   :  { %v938_v61 = vmul.f32 %v2058_v12, %v2058_v12  ;;  %v2062_v62 = vpop.f32.mrb[1].mxu1 }
 0x470   :  { %v915_v2 = vadd.f32 %v2058_v12, %v2062_v62  ;;  %v937_v10 = vmul.f32 %v2062_v62, %v2062_v62 }
 0x472   :  { %v941_v63 = vadd.f32 %v938_v61, %v937_v10  ;;  %v2068_v19 = vpop.f32.mrb[2].mxu1  ;;  %v965_v61 = vld [vmem:[%s2129_s7] sm:$0x1]  ;;  %s1775_s7 = smov [#allocation10]  }
 0x473   :  { %v2070_v7 = vpop.f32.mrb[3].mxu1  ;;  %v940_v1 = vmul.f32 %v2068_v19, %v2068_v19 }
 0x474   :  { %v916_v18 = vadd.f32 %v915_v2, %v2070_v7  ;;  %v939_v0 = vmul.f32 %v2070_v7, %v2070_v7 }
 0x476   :  { %v917_v3 = vadd.f32 %v2068_v19, %v916_v18  ;;  %v942_v4 = vadd.f32 %v941_v63, %v939_v0  ;;  %v969_v63 = vld [vmem:[%s2130_s8] sm:$0x1] }
 0x478   :  { %v918_v5 = vrot.slane %v917_v3, 4  ;;  %v943_v6 = vadd.f32 %v942_v4, %v940_v1 }
 0x47a   :  { %v919_v9 = vadd.f32 %v918_v5, %v917_v3  ;;  %v944_v11 = vrot.slane %v943_v6, 4  ;;  %v1143_v3 = vld [vmem:[%s2126_s4] ss:$0 sm:$0xff]  ;;  %s1109_s4 = sshll.u32 %s1775_s7, 4  ;;  %s1110_s4 = int_to_ptr.vmem [resolvable:$true] %s1109_s4 }
 0x47b   :  { %v1089_v5 = vadd.f32 %v1457_v46, %v1143_v3  ;;  %s1736_s8 = scalar_lea.vmem %s1110_s4, 512  ;;  %p1741_p5 = scmp.lt.s32.totalorder %s1110_s4, %s1110_s4 }
 0x47c   :  { %v920_v13 = vrot.slane %v919_v9, 2  ;;  %v945_v14 = vadd.f32 %v944_v11, %v943_v6  ;;  %v1084_v6 = vadd.f32 %v1143_v3, %v1083_v17  ;;  %p1737_p4 = scmp.ne.s32.totalorder %s1110_s4, %s1736_s8  ;;  %p1742_p6 = scmp.lt.s32.totalorder %s1736_s8, %s1736_s8 }
 0x47e   :  { %v921_v15 = vadd.f32 %v920_v13, %v919_v9  ;;  %v946_v8 = vrot.slane %v945_v14, 2  ;;  %p1743_p7 = por %p1742_p6, %p1741_p5 }
 0x480   :  { %v922_v20 = vrot.slane %v921_v15, 1  ;;  %v947_v30 = vadd.f32 %v946_v8, %v945_v14  ;;  %v1074_v8 = vadd.f32 %v1143_v3, %v1073_v26  ;;  %p1744_p8 = pnand %p1743_p7, %p1737_p4 }
 0x482   :  { %v923_v21 = vadd.f32 %v922_v20, %v921_v15  ;;  %v948_v22 = vrot.slane %v947_v30, 1  ;;  %v1079_v15 = vadd.f32 %v1454_v24, %v1143_v3 }
 0x484   :  { %924 = vrot.lane.b32.xlu0 %v923_v21, %s1769_s22  ;;  %v949_v23 = vadd.f32 %v948_v22, %v947_v30 }
 0x486   :  { %950 = vrot.lane.b32.xlu1 %v949_v23, %s1769_s22 }
 0x4f6   :  { %v925_v35 = vpop.permute.xlu0 %924 }
 0x4f7   :  { %v926_v39 = vadd.f32 %v925_v35, %v923_v21 }
 0x4f8   :  { %v951_v40 = vpop.permute.xlu1 %950 }
 0x4f9   :  { %v952_v41 = vadd.f32 %v951_v40, %v949_v23  ;;  %927 = vrot.lane.b32.xlu0 %v926_v39, %s1772_s3 }
 0x4fb   :  { %953 = vrot.lane.b32.xlu1 %v952_v41, %s1772_s3 }
 0x56b   :  { %v928_v43 = vpop.permute.xlu0 %927 }
 0x56c   :  { %v929_v44 = vadd.f32 %v928_v43, %v926_v39 }
 0x56d   :  { %v954_v45 = vpop.permute.xlu1 %953 }
 0x56e   :  { %v955_v47 = vadd.f32 %v954_v45, %v952_v41  ;;  %930 = vrot.lane.b32.xlu0 %v929_v44, %s1773_s16 }
 0x570   :  { %956 = vrot.lane.b32.xlu1 %v955_v47, %s1773_s16 }
 0x5e0   :  { %v931_v48 = vpop.permute.xlu0 %930 }
 0x5e1   :  { %v932_v49 = vadd.f32 %v931_v48, %v929_v44 }
 0x5e2   :  { %v957_v50 = vpop.permute.xlu1 %956 }
 0x5e3   :  { %v958_v51 = vadd.f32 %v957_v50, %v955_v47  ;;  %933 = vrot.lane.b32.xlu0 %v932_v49, %s1774_s17 }
 0x5e5   :  { %959 = vrot.lane.b32.xlu1 %v958_v51, %s1774_s17 }
 0x655   :  { %v934_v52 = vpop.permute.xlu0 %933 }
 0x656   :  { %v935_v53 = vadd.f32 %v934_v52, %v932_v49 }
 0x657   :  { %v960_v54 = vpop.permute.xlu1 %959 }
 0x658   :  { %v936_v55 = vmul.f32 0.001953125, %v935_v53  ;;  %v961_v56 = vadd.f32 %v960_v54, %v958_v51 }
 0x65a   :  { %v963_v57 = vmul.f32 %v936_v55, %v936_v55  ;;  %v962_v58 = vmul.f32 0.001953125, %v961_v56 }
 0x65c   :  { %v964_v59 = vsub.f32 %v962_v58, %v963_v57 }
 0x65e   :  { %v966_v60 = vadd.f32 1e-05, %v964_v59 }
 0x660   :  { %1646 = vrsqrt.f32 %v966_v60 }
 0x66a   :  { %v1647_v2 = vpop.eup %1646 }
 0x66b   :  { %v968_v10 = vmul.f32 %v1647_v2, %v965_v61 }
 0x66d   :  { %v970_v18 = vmul.f32 %v968_v10, %v936_v55  ;;  %v976_v0 = vrot.slane %v968_v10, %v2014_v37 }
 0x66f   :  { %v971_v1 = vsub.f32 %v969_v63, %v970_v18  ;;  %v979_v4 = vmul.f32 %v2058_v12, %v976_v0  ;;  %v978_v11 = vmul.f32 %v976_v0, %v2062_v62  ;;  %v981_v13 = vmul.f32 %v2068_v19, %v976_v0 }
 0x670   :  { %v980_v14 = vmul.f32 %v976_v0, %v2070_v7 }
 0x671   :  { %v986_v9 = vrot.slane %v971_v1, %v2014_v37 }
 0x673   :  { %v989_v20 = vadd.f32 %v986_v9, %v979_v4  ;;  %v988_v30 = vadd.f32 %v986_v9, %v978_v11  ;;  %v991_v21 = vadd.f32 %v986_v9, %v981_v13  ;;  %v990_v22 = vadd.f32 %v986_v9, %v980_v14 }
 0x675   :  { %v1093_v23 = vadd.f32 %v1079_v15, %v989_v20  ;;  %v1092_v12 = vadd.f32 %v1074_v8, %v988_v30  ;;  %v1095_v25 = vadd.f32 %v1089_v5, %v991_v21  ;;  %v1094_v27 = vadd.f32 %v1084_v6, %v990_v22 }
 0x677   :  { %v1097_v28 = vmax.f32 %v1093_v23, 0.0  ;;  %v1096_v37 = vmax.f32 %v1092_v12, 0.0  ;;  %v1099_v29 = vmax.f32 %v1095_v25, 0.0  ;;  %v1098_v62 = vmax.f32 %v1094_v27, 0.0 }
 0x679   :  { %1101 = vst [vmem:[#allocation10 + $0x8] sm:$0xff] %v1097_v28  ;;  %1100 = vst [vmem:[#allocation10] sm:$0xff] %v1096_v37 }
 0x67a   :  { %1103 = vst [vmem:[#allocation10 + $0x18] sm:$0xff] %v1099_v29  ;;  %1102 = vst [vmem:[#allocation10 + $0x10] sm:$0xff] %v1098_v62 }
 0x67b   :  { %1747 = shalt.err (!%p1744_p8)
}
 0x67c   :  { %s1748_s28 = scalar_lea.hbm %s2131_s9, 512 }
 0x67d   :  { %p1749_p9 = scmp.ne.s32.totalorder %s2131_s9, %s1748_s28  ;;  %p1752_p10 = scmp.lt.u32.totalorder %s1748_s28, %s2131_s9 }
 0x67f   :  { %p1754_p11 = pnand %p1752_p10, %p1749_p9 }
 0x681   :  { %1757 = shalt.err (!%p1754_p11)
}
 0x682   :  { %1115 = dma.vmem_to_hbm [thread:$0]  %s1110_s4, 512, %s2131_s9, [#allocation4], %s1768_s21, %s1768_s21, %s1769_s22  }
 0x683   :  { %1764 = dma.done.wait [#allocation4], 512  }
 0x684   :  { %1765 = vsyncadd [#allocation4], 4294966784 }
 0x685   :  { %1119 = vsyncpa [#allocation3], 1 }
 0x686   :  { %1120 = vsyncpa [#allocation6], 1 }
 0x687   :  { %1121 = vsyncpa [#allocation9], 1 }
 0x688   :  { %1122 = vsyncpa [#allocation4], 1 }

</bundles_post_ra>
